<compile_context>
chip_gen: v7x
topology: tpu7x:2x2x1
jax: 0.10.0
libtpu: 0.0.40
codegen_flags: <defaults>
</compile_context>

<pallas_src>
import math

import jax
import jax.numpy as jnp
import numpy as np
from jax import lax
from jax.experimental import pallas as pl
from jax.experimental.pallas import tpu as pltpu

_BN_EPS = 1e-5
_INV_SQRT2 = 0.7071067811865476  # 1/sqrt(2)


# --------------------------------------------------------------------------
# small helpers
# --------------------------------------------------------------------------
def _round_up(a, b):
    return (a + b - 1) // b * b


def _largest_divisor_leq(n, cap):
    cap = max(1, min(n, cap))
    for d in range(cap, 0, -1):
        if n % d == 0:
            return d
    return 1


def _tpu_vmem_capacity_bytes():
    """Per-generation VMEM capacity (v5e/v6e: 128 MiB, v7x: 64 MiB); None if unknown."""
    try:
        info = pltpu.get_tpu_info()
        cap = int(getattr(info, "vmem_capacity_bytes", 0) or 0)
        if cap > 0:
            return cap
    except Exception:
        pass
    return None


def _pick_lane_tile(hw, max_lanes):
    """Lane tile tm (multiple of 128) and padded spatial extent hw_pad (tm | hw_pad)."""
    cap = max(128, (min(max_lanes, 32768) // 128) * 128)
    hw128 = _round_up(hw, 128)
    if hw128 <= cap:
        return hw128, hw128                      # single spatial tile per sample
    L = hw128 // 128
    tm = 128 * _largest_divisor_leq(L, cap // 128)
    if tm >= min(2048, cap):
        return tm, hw128                         # large divisor tile, <=127 pad lanes
    tm = min(cap, 4096)                          # poor factorization: pad up to tm
    return tm, _round_up(hw, tm)


def _gelu_exact(x):
    # PyTorch nn.GELU default (approximate='none')
    return 0.5 * x * (1.0 + lax.erf(x * _INV_SQRT2))


# --------------------------------------------------------------------------
# kernels
# --------------------------------------------------------------------------
def _make_fused_kernel(n, cout, hw, hw_pad):
    """Single-launch path: conv + BN batch stats + folded affine + GELU, all in VMEM."""
    padded = hw_pad != hw
    inv_cnt = 1.0 / float(n * hw)

    def kernel(x_ref, w_ref, gamma_ref, beta_ref, o_ref):
        # x_ref: (N, Cin, HWp)  w_ref: (Cout, Cin)  gamma/beta: (Cout, 1)
        # o_ref: (N, Cout, HWp)
        w = w_ref[...]
        if padded:
            lane = lax.broadcasted_iota(jnp.int32, (cout, hw_pad), 1)
            mask = lane < hw

        ys = []
        total = jnp.zeros((cout, 1), jnp.float32)
        for b in range(n):                                        # n is small here
            y = jnp.dot(w, x_ref[b], preferred_element_type=jnp.float32)
            if padded:
                y = jnp.where(mask, y, 0.0)
            ys.append(y)
            total = total + jnp.sum(y, axis=-1, keepdims=True)

        mean = total * inv_cnt                                    # (Cout, 1)
        m2 = jnp.zeros((cout, 1), jnp.float32)
        for b in range(n):
            d = ys[b] - mean
            if padded:
                d = jnp.where(mask, d, 0.0)
            m2 = m2 + jnp.sum(d * d, axis=-1, keepdims=True)
        var = m2 * inv_cnt                                        # biased, train-mode BN

        scale = gamma_ref[...] * lax.rsqrt(var + _BN_EPS)
        shift = beta_ref[...] - mean * scale
        for b in range(n):
            o_ref[b] = _gelu_exact(ys[b] * scale + shift)

    return kernel


def _make_conv_stats_kernel(nb, cout, tm, hw, hw_pad, emit_y):
    """Pass 1: 1x1 conv tile + per-tile BN partials [sum, M2]; optionally stores Y."""
    padded = hw_pad != hw

    def body(x_ref, w_ref, stats_ref, y_ref):
        # x_ref: (nb, Cin, tm)  w_ref: (Cout, Cin)  stats_ref: (1, Cout, 2)
        w = w_ref[...]
        if padded:
            i = pl.program_id(1)
            valid = jnp.minimum(jnp.int32(tm), jnp.int32(hw) - i * tm)
            lane = lax.broadcasted_iota(jnp.int32, (cout, tm), 1)
            mask = lane < valid
            count = (nb * valid).astype(jnp.float32)
        else:
            count = jnp.float32(nb * tm)

        ys = []
        total = jnp.zeros((cout, 1), jnp.float32)
        for b in range(nb):                                       # nb <= 8 (static)
            y = jnp.dot(w, x_ref[b], preferred_element_type=jnp.float32)  # (Cout, tm)
            if padded:
                y = jnp.where(mask, y, 0.0)
            if y_ref is not None:
                y_ref[b] = y
            ys.append(y)
            total = total + jnp.sum(y, axis=-1, keepdims=True)

        mean = total / count
        m2 = jnp.zeros((cout, 1), jnp.float32)
        for b in range(nb):
            d = ys[b] - mean
            if padded:
                d = jnp.where(mask, d, 0.0)
            m2 = m2 + jnp.sum(d * d, axis=-1, keepdims=True)

        stats_ref[0] = jnp.concatenate([total, m2], axis=-1)      # (Cout, 2) = [sum, M2]

    if emit_y:
        def kernel(x_ref, w_ref, y_ref, stats_ref):
            body(x_ref, w_ref, stats_ref, y_ref)
    else:
        def kernel(x_ref, w_ref, stats_ref):
            body(x_ref, w_ref, stats_ref, None)
    return kernel


def _make_apply_from_x_kernel(nb):
    """Pass 2 (recompute-Y variant): Y = W @ X, folded BN affine, exact GELU."""
    def kernel(x_ref, w_ref, scale_ref, shift_ref, o_ref):
        w = w_ref[...]
        scale = scale_ref[...]                                    # (Cout, 1)
        shift = shift_ref[...]
        for b in range(nb):
            y = jnp.dot(w, x_ref[b], preferred_element_type=jnp.float32)
            o_ref[b] = _gelu_exact(y * scale + shift)
    return kernel


def _apply_from_y_kernel(y_ref, scale_ref, shift_ref, o_ref):
    """Pass 2 (materialized-Y variant): folded BN affine + exact GELU."""
    yh = y_ref[...] * scale_ref[...] + shift_ref[...]
    o_ref[...] = _gelu_exact(yh)


# --------------------------------------------------------------------------
# wrapper
# --------------------------------------------------------------------------
def trans_forward(x_nchw, conv_w, conv_b, bn_gamma, bn_beta, *, force_tiled=False):
    """Trans forward.  x_nchw: [N, Cin, H, W] float32 -> [N, Cout, H, W]."""
    # Conv bias cancels exactly under train-mode BatchNorm (mean subtraction
    # removes it, variance is shift-invariant).  NOT valid for eval-mode BN.
    del conv_b

    n, cin, h, w = x_nchw.shape
    cout = conv_w.shape[0]
    hw = h * w

    x3 = x_nchw.reshape(n, cin, hw).astype(jnp.float32)           # pure reshape
    w2 = conv_w.reshape(cout, cin).astype(jnp.float32)
    gamma = bn_gamma.astype(jnp.float32).reshape(cout, 1)
    beta = bn_beta.astype(jnp.float32).reshape(cout, 1)

    # Per-generation VMEM budgeting (v7x has only 64 MiB vs 128 MiB on v5e/v6e).
    cap = _tpu_vmem_capacity_bytes()
    if cap:
        budget = min(cap // 8, 12 << 20)
        vmem_limit = int(cap * 3 // 4)
    else:
        budget = 6 << 20        # safe under every generation's default scoped limit
        vmem_limit = None

    hw128 = _round_up(hw, 128)

    # ---------------- fused single-launch path for small problems ----------------
    fused_bytes = n * (cin + 3 * cout) * hw128 * 4
    if (not force_tiled) and n <= 32 and fused_bytes <= budget:
        xp = x3 if hw128 == hw else jnp.pad(x3, ((0, 0), (0, 0), (0, hw128 - hw)))
        out3 = pl.pallas_call(
            _make_fused_kernel(n, cout, hw, hw128),
            out_shape=jax.ShapeDtypeStruct((n, cout, hw128), jnp.float32),
            grid_spec=pltpu.PrefetchScalarGridSpec(
                num_scalar_prefetch=0,
                grid=(1,),
                in_specs=[
                    pl.BlockSpec((n, cin, hw128), lambda i: (0, 0, 0)),
                    pl.BlockSpec((cout, cin), lambda i: (0, 0)),
                    pl.BlockSpec((cout, 1), lambda i: (0, 0)),
                    pl.BlockSpec((cout, 1), lambda i: (0, 0)),
                ],
                out_specs=pl.BlockSpec((n, cout, hw128), lambda i: (0, 0, 0)),
            ),
            compiler_params=pltpu.CompilerParams(
                dimension_semantics=("arbitrary",),
                vmem_limit_bytes=vmem_limit),
        )(xp, w2, gamma, beta)
        if hw128 != hw:
            out3 = out3[:, :, :hw]
        return out3.reshape(n, cout, h, w)

    # ---------------- tiled two-pass path ----------------
    # Recompute Y in pass 2 when re-reading X+W is cheaper than a Y round-trip.
    recompute = cin < 2 * cout

    bytes_per_lane = 2 * (cin + cout) * 4          # double-buffered f32 tiles per lane
    max_lanes = max(128, budget // bytes_per_lane)
    tm, hw_pad = _pick_lane_tile(hw, max_lanes)
    nt = hw_pad // tm

    nb = 1
    if nt == 1 and n > 1:
        want = max(1, -(-2048 // tm))              # fold batch toward ~2048 lanes/step
        cap_b = max(1, min(n // 2, max_lanes // tm, 8))
        nb = _largest_divisor_leq(n, min(want, cap_b))
    if n == 1 and nt == 1 and tm % 256 == 0:       # keep >=2 steps for v7x's 2nd core
        tm //= 2
        nt = 2

    nbb = n // nb
    t_total = nbb * nt
    grid = (nbb, nt)
    xp = x3 if hw_pad == hw else jnp.pad(x3, ((0, 0), (0, 0), (0, hw_pad - hw)))

    params2 = pltpu.CompilerParams(
        dimension_semantics=("parallel", "parallel"),
        vmem_limit_bytes=vmem_limit)

    x_spec = pl.BlockSpec((nb, cin, tm), lambda b, i: (b, 0, i))
    w_spec = pl.BlockSpec((cout, cin), lambda b, i: (0, 0))
    chan_spec = pl.BlockSpec((cout, 1), lambda b, i: (0, 0))
    y_spec = pl.BlockSpec((nb, cout, tm), lambda b, i: (b, 0, i))
    o_spec = pl.BlockSpec((nb, cout, tm), lambda b, i: (b, 0, i))
    stats_spec = pl.BlockSpec((1, cout, 2), lambda b, i: (b * nt + i, 0, 0))
    stats_shape = jax.ShapeDtypeStruct((t_total, cout, 2), jnp.float32)

    # -- pass 1: conv + per-tile BN partials (+ Y only if not recomputing) --
    if recompute:
        part = pl.pallas_call(
            _make_conv_stats_kernel(nb, cout, tm, hw, hw_pad, emit_y=False),
            out_shape=stats_shape,
            grid_spec=pltpu.PrefetchScalarGridSpec(
                num_scalar_prefetch=0, grid=grid,
                in_specs=[x_spec, w_spec], out_specs=stats_spec),
            compiler_params=params2,
        )(xp, w2)
        y3 = None
    else:
        y3, part = pl.pallas_call(
            _make_conv_stats_kernel(nb, cout, tm, hw, hw_pad, emit_y=True),
            out_shape=(jax.ShapeDtypeStruct((n, cout, hw_pad), jnp.float32),
                       stats_shape),
            grid_spec=pltpu.PrefetchScalarGridSpec(
                num_scalar_prefetch=0, grid=grid,
                in_specs=[x_spec, w_spec], out_specs=(y_spec, stats_spec)),
            compiler_params=params2,
        )(xp, w2)

    # -- Chan-style combine of per-tile [sum, M2] (tiny XLA-side op) --
    counts_sp = np.minimum(tm, hw - np.arange(nt) * tm).astype(np.float32) * nb
    cnt = jnp.asarray(np.tile(counts_sp, nbb))[:, None]            # (T, 1)
    total_count = float(n * hw)
    sum_t = part[:, :, 0]                                          # (T, Cout)
    m2_t = part[:, :, 1]
    mean = jnp.sum(sum_t, axis=0) / total_count                    # (Cout,)
    mean_t = sum_t / cnt
    m2 = jnp.sum(m2_t, axis=0) + jnp.sum(cnt * (mean_t - mean[None, :]) ** 2, axis=0)
    var = m2 / total_count                                         # biased (train-mode)

    scale = (gamma[:, 0] * lax.rsqrt(var + _BN_EPS)).reshape(cout, 1)
    shift = (beta[:, 0] - mean * scale[:, 0]).reshape(cout, 1)

    # -- pass 2: fused affine + exact GELU --
    out_shape = jax.ShapeDtypeStruct((n, cout, hw_pad), jnp.float32)
    if recompute:
        out3 = pl.pallas_call(
            _make_apply_from_x_kernel(nb),
            out_shape=out_shape,
            grid_spec=pltpu.PrefetchScalarGridSpec(
                num_scalar_prefetch=0, grid=grid,
                in_specs=[x_spec, w_spec, chan_spec, chan_spec],
                out_specs=o_spec),
            compiler_params=params2,
        )(xp, w2, scale, shift)
    else:
        out3 = pl.pallas_call(
            _apply_from_y_kernel,
            out_shape=out_shape,
            grid_spec=pltpu.PrefetchScalarGridSpec(
                num_scalar_prefetch=0, grid=grid,
                in_specs=[y_spec, chan_spec, chan_spec],
                out_specs=o_spec),
            compiler_params=params2,
        )(y3, scale, shift)

    if hw_pad != hw:
        out3 = out3[:, :, :hw]
    return out3.reshape(n, cout, h, w)             # already NCHW, pure reshape


# --------------------------------------------------------------------------
# pure-JAX reference
# --------------------------------------------------------------------------
def _reference(x_nchw, conv_w, conv_b, bn_gamma, bn_beta):
    n, cin, h, w = x_nchw.shape
    cout = conv_w.shape[0]
    x2 = jnp.transpose(x_nchw, (0, 2, 3, 1)).reshape(-1, cin)
    y = x2 @ conv_w.reshape(cout, cin).T + conv_b[None, :]
    mu = jnp.mean(y, axis=0, keepdims=True)
    var = jnp.mean((y - mu) ** 2, axis=0, keepdims=True)
    yh = (y - mu) / jnp.sqrt(var + _BN_EPS)
    yh = yh * bn_gamma[None, :] + bn_beta[None, :]
    g = 0.5 * yh * (1.0 + lax.erf(yh / jnp.sqrt(2.0)))
    return jnp.transpose(g.reshape(n, h, w, cout), (0, 3, 1, 2))


if __name__ == "__main__":
    key = jax.random.PRNGKey(0)

    def make_case(key, n, inc, outc, h, w):
        kx, kw = jax.random.split(key)
        x = jax.random.normal(kx, (n, inc, h, w), dtype=jnp.float32)
        # Conv2d init from _init_weights: normal(0, sqrt(2/fan_out)), fan_out=outc.
        cw = jax.random.normal(kw, (outc, inc, 1, 1), dtype=jnp.float32) * math.sqrt(2.0 / outc)
        cb = jnp.zeros((outc,), jnp.float32)       # bias init zero
        g = jnp.ones((outc,), jnp.float32)         # BN weight init 1
        b = jnp.zeros((outc,), jnp.float32)        # BN bias init 0
        return x, cw, cb, g, b

    # main case: [2, 4, 16, 16] -> fused single-launch path
    k1, k2 = jax.random.split(key)
    x, cw, cb, g, b = make_case(k1, 2, 4, 8, 16, 16)
    out = jax.block_until_ready(trans_forward(x, cw, cb, g, b))
    ref = _reference(x, cw, cb, g, b)
    assert out.shape == (2, 8, 16, 16)
    assert jnp.allclose(out, ref, atol=1e-4, rtol=1e-4), "fused path mismatch"

    # same case, forced tiled path (recompute-Y variant, Cin < 2*Cout)
    out_t = jax.block_until_ready(trans_forward(x, cw, cb, g, b, force_tiled=True))
    assert jnp.allclose(out_t, ref, atol=1e-4, rtol=1e-4), "tiled recompute path mismatch"

    # padded-lanes case (H*W = 100, not a multiple of 128) with Cin >= 2*Cout:
    # exercises the padding masks, the fused path, and the materialized-Y tiled path.
    x2, cw2, cb2, g2, b2 = make_case(k2, 2, 16, 4, 10, 10)
    ref2 = _reference(x2, cw2, cb2, g2, b2)
    out2 = jax.block_until_ready(trans_forward(x2, cw2, cb2, g2, b2))
    assert out2.shape == (2, 4, 10, 10)
    assert jnp.allclose(out2, ref2, atol=1e-4, rtol=1e-4), "fused padded path mismatch"
    out2_t = jax.block_until_ready(trans_forward(x2, cw2, cb2, g2, b2, force_tiled=True))
    assert jnp.allclose(out2_t, ref2, atol=1e-4, rtol=1e-4), "tiled keep-Y path mismatch"

    print("KERNEL_OK")
</pallas_src>

<mosaic_0001>
module attributes {stable_mosaic.version = 11 : i64} {
  func.func @kernel(%arg0: i32, %arg1: memref<2x4x256xf32, #tpu.memory_space<vmem>>, %arg2: memref<8x4xf32, #tpu.memory_space<vmem>>, %arg3: memref<8x1xf32, #tpu.memory_space<vmem>>, %arg4: memref<8x1xf32, #tpu.memory_space<vmem>>, %arg5: memref<2x8x256xf32, #tpu.memory_space<vmem>>) attributes {dimension_semantics = [#tpu.dimension_semantics<arbitrary>], iteration_bounds = array<i64: 1>, scalar_prefetch = 0 : i64, scratch_operands = 0 : i64, tpu.core_type = #tpu.core_type<tc>, window_params = [{pipeline_mode = #tpu.pipeline_mode<synchronous>, transform_indices = @transform_0, window_bounds = array<i64: 2, 4, 256>}, {pipeline_mode = #tpu.pipeline_mode<synchronous>, transform_indices = @transform_1, window_bounds = array<i64: 8, 4>}, {pipeline_mode = #tpu.pipeline_mode<synchronous>, transform_indices = @transform_2, window_bounds = array<i64: 8, 1>}, {pipeline_mode = #tpu.pipeline_mode<synchronous>, transform_indices = @transform_3, window_bounds = array<i64: 8, 1>}, {pipeline_mode = #tpu.pipeline_mode<synchronous>, transform_indices = @transform_4, window_bounds = array<i64: 2, 8, 256>}]} {
    %c0 = arith.constant 0 : index
    %c0_0 = arith.constant 0 : index
    %0 = vector.load %arg2[%c0, %c0_0] : memref<8x4xf32, #tpu.memory_space<vmem>>, vector<8x4xf32>
    %cst = arith.constant 0.000000e+00 : f32
    %1 = vector.broadcast %cst : f32 to vector<8x1xf32>
    %c0_1 = arith.constant 0 : index
    %c0_2 = arith.constant 0 : index
    %c0_3 = arith.constant 0 : index
    %2 = vector.load %arg1[%c0_1, %c0_2, %c0_3] : memref<2x4x256xf32, #tpu.memory_space<vmem>>, vector<1x4x256xf32>
    %3 = vector.shape_cast %2 : vector<1x4x256xf32> to vector<4x256xf32>
    %cst_4 = arith.constant dense<0.000000e+00> : vector<8x256xf32>
    %4 = tpu.matmul %0, %3, %cst_4 {dimension_numbers = #tpu.dot_dimension_numbers<[1], [0], [0], [1], [0, 0, 1, 1], [], []>} : vector<8x4xf32>, vector<4x256xf32>, vector<8x256xf32> -> vector<8x256xf32>
    %cst_5 = arith.constant dense<0.000000e+00> : vector<8xf32>
    %5 = vector.multi_reduction <add>, %4, %cst_5 [1] : vector<8x256xf32> to vector<8xf32>
    %6 = vector.shape_cast %5 : vector<8xf32> to vector<8x1xf32>
    %7 = arith.addf %1, %6 : vector<8x1xf32>
    %c1 = arith.constant 1 : index
    %c0_6 = arith.constant 0 : index
    %c0_7 = arith.constant 0 : index
    %8 = vector.load %arg1[%c1, %c0_6, %c0_7] : memref<2x4x256xf32, #tpu.memory_space<vmem>>, vector<1x4x256xf32>
    %9 = vector.shape_cast %8 : vector<1x4x256xf32> to vector<4x256xf32>
    %cst_8 = arith.constant dense<0.000000e+00> : vector<8x256xf32>
    %10 = tpu.matmul %0, %9, %cst_8 {dimension_numbers = #tpu.dot_dimension_numbers<[1], [0], [0], [1], [0, 0, 1, 1], [], []>} : vector<8x4xf32>, vector<4x256xf32>, vector<8x256xf32> -> vector<8x256xf32>
    %cst_9 = arith.constant dense<0.000000e+00> : vector<8xf32>
    %11 = vector.multi_reduction <add>, %10, %cst_9 [1] : vector<8x256xf32> to vector<8xf32>
    %12 = vector.shape_cast %11 : vector<8xf32> to vector<8x1xf32>
    %13 = arith.addf %7, %12 : vector<8x1xf32>
    %cst_10 = arith.constant 0.001953125 : f32
    %14 = vector.broadcast %cst_10 : f32 to vector<8x1xf32>
    %15 = arith.mulf %13, %14 : vector<8x1xf32>
    %cst_11 = arith.constant 0.000000e+00 : f32
    %16 = vector.broadcast %cst_11 : f32 to vector<8x1xf32>
    %17 = vector.broadcast %15 : vector<8x1xf32> to vector<8x256xf32>
    %18 = arith.subf %4, %17 : vector<8x256xf32>
    %19 = arith.mulf %18, %18 : vector<8x256xf32>
    %cst_12 = arith.constant dense<0.000000e+00> : vector<8xf32>
    %20 = vector.multi_reduction <add>, %19, %cst_12 [1] : vector<8x256xf32> to vector<8xf32>
    %21 = vector.shape_cast %20 : vector<8xf32> to vector<8x1xf32>
    %22 = arith.addf %16, %21 : vector<8x1xf32>
    %23 = vector.broadcast %15 : vector<8x1xf32> to vector<8x256xf32>
    %24 = arith.subf %10, %23 : vector<8x256xf32>
    %25 = arith.mulf %24, %24 : vector<8x256xf32>
    %cst_13 = arith.constant dense<0.000000e+00> : vector<8xf32>
    %26 = vector.multi_reduction <add>, %25, %cst_13 [1] : vector<8x256xf32> to vector<8xf32>
    %27 = vector.shape_cast %26 : vector<8xf32> to vector<8x1xf32>
    %28 = arith.addf %22, %27 : vector<8x1xf32>
    %cst_14 = arith.constant 0.001953125 : f32
    %29 = vector.broadcast %cst_14 : f32 to vector<8x1xf32>
    %30 = arith.mulf %28, %29 : vector<8x1xf32>
    %c0_15 = arith.constant 0 : index
    %c0_16 = arith.constant 0 : index
    %31 = vector.load %arg3[%c0_15, %c0_16] : memref<8x1xf32, #tpu.memory_space<vmem>>, vector<8x1xf32>
    %cst_17 = arith.constant 9.99999974E-6 : f32
    %32 = vector.broadcast %cst_17 : f32 to vector<8x1xf32>
    %33 = arith.addf %30, %32 : vector<8x1xf32>
    %34 = math.rsqrt %33 : vector<8x1xf32>
    %35 = arith.mulf %31, %34 : vector<8x1xf32>
    %c0_18 = arith.constant 0 : index
    %c0_19 = arith.constant 0 : index
    %36 = vector.load %arg4[%c0_18, %c0_19] : memref<8x1xf32, #tpu.memory_space<vmem>>, vector<8x1xf32>
    %37 = arith.mulf %15, %35 : vector<8x1xf32>
    %38 = arith.subf %36, %37 : vector<8x1xf32>
    %39 = vector.broadcast %35 : vector<8x1xf32> to vector<8x256xf32>
    %40 = arith.mulf %4, %39 : vector<8x256xf32>
    %41 = vector.broadcast %38 : vector<8x1xf32> to vector<8x256xf32>
    %42 = arith.addf %40, %41 : vector<8x256xf32>
    %cst_20 = arith.constant 5.000000e-01 : f32
    %43 = vector.broadcast %cst_20 : f32 to vector<8x256xf32>
    %44 = arith.mulf %43, %42 : vector<8x256xf32>
    %cst_21 = arith.constant 0.707106769 : f32
    %45 = vector.broadcast %cst_21 : f32 to vector<8x256xf32>
    %46 = arith.mulf %42, %45 : vector<8x256xf32>
    %47 = math.erf %46 : vector<8x256xf32>
    %cst_22 = arith.constant 1.000000e+00 : f32
    %48 = vector.broadcast %cst_22 : f32 to vector<8x256xf32>
    %49 = arith.addf %48, %47 : vector<8x256xf32>
    %50 = arith.mulf %44, %49 : vector<8x256xf32>
    %c0_23 = arith.constant 0 : index
    %c0_24 = arith.constant 0 : index
    %c0_25 = arith.constant 0 : index
    %51 = vector.load %arg5[%c0_23, %c0_24, %c0_25] : memref<2x8x256xf32, #tpu.memory_space<vmem>>, vector<1x8x256xf32>
    %52 = vector.shape_cast %51 : vector<1x8x256xf32> to vector<8x256xf32>
    %53 = vector.shape_cast %50 : vector<8x256xf32> to vector<1x8x256xf32>
    tpu.vector_store %arg5[%c0_23, %c0_24, %c0_25], %53 {strides = array<i32>} : memref<2x8x256xf32, #tpu.memory_space<vmem>>, vector<1x8x256xf32>,
    %54 = vector.broadcast %35 : vector<8x1xf32> to vector<8x256xf32>
    %55 = arith.mulf %10, %54 : vector<8x256xf32>
    %56 = vector.broadcast %38 : vector<8x1xf32> to vector<8x256xf32>
    %57 = arith.addf %55, %56 : vector<8x256xf32>
    %cst_26 = arith.constant 5.000000e-01 : f32
    %58 = vector.broadcast %cst_26 : f32 to vector<8x256xf32>
    %59 = arith.mulf %58, %57 : vector<8x256xf32>
    %cst_27 = arith.constant 0.707106769 : f32
    %60 = vector.broadcast %cst_27 : f32 to vector<8x256xf32>
    %61 = arith.mulf %57, %60 : vector<8x256xf32>
    %62 = math.erf %61 : vector<8x256xf32>
    %cst_28 = arith.constant 1.000000e+00 : f32
    %63 = vector.broadcast %cst_28 : f32 to vector<8x256xf32>
    %64 = arith.addf %63, %62 : vector<8x256xf32>
    %65 = arith.mulf %59, %64 : vector<8x256xf32>
    %c1_29 = arith.constant 1 : index
    %c0_30 = arith.constant 0 : index
    %c0_31 = arith.constant 0 : index
    %66 = vector.load %arg5[%c1_29, %c0_30, %c0_31] : memref<2x8x256xf32, #tpu.memory_space<vmem>>, vector<1x8x256xf32>
    %67 = vector.shape_cast %66 : vector<1x8x256xf32> to vector<8x256xf32>
    %68 = vector.shape_cast %65 : vector<8x256xf32> to vector<1x8x256xf32>
    tpu.vector_store %arg5[%c1_29, %c0_30, %c0_31], %68 {strides = array<i32>} : memref<2x8x256xf32, #tpu.memory_space<vmem>>, vector<1x8x256xf32>,
    return
  }
  func.func @transform_0(%arg0: i32) -> (i32, i32, i32) {
    %c0_i32 = arith.constant 0 : i32
    %c0_i32_0 = arith.constant 0 : i32
    %c0_i32_1 = arith.constant 0 : i32
    %c0_i32_2 = arith.constant 0 : i32
    return %c0_i32, %c0_i32_0, %c0_i32_1 : i32, i32, i32
  }
  func.func @transform_1(%arg0: i32) -> (i32, i32) {
    %c0_i32 = arith.constant 0 : i32
    %c0_i32_0 = arith.constant 0 : i32
    %c0_i32_1 = arith.constant 0 : i32
    return %c0_i32, %c0_i32_0 : i32, i32
  }
  func.func @transform_2(%arg0: i32) -> (i32, i32) {
    %c0_i32 = arith.constant 0 : i32
    %c0_i32_0 = arith.constant 0 : i32
    %c0_i32_1 = arith.constant 0 : i32
    return %c0_i32, %c0_i32_0 : i32, i32
  }
  func.func @transform_3(%arg0: i32) -> (i32, i32) {
    %c0_i32 = arith.constant 0 : i32
    %c0_i32_0 = arith.constant 0 : i32
    %c0_i32_1 = arith.constant 0 : i32
    return %c0_i32, %c0_i32_0 : i32, i32
  }
  func.func @transform_4(%arg0: i32) -> (i32, i32, i32) {
    %c0_i32 = arith.constant 0 : i32
    %c0_i32_0 = arith.constant 0 : i32
    %c0_i32_1 = arith.constant 0 : i32
    %c0_i32_2 = arith.constant 0 : i32
    return %c0_i32, %c0_i32_0, %c0_i32_1 : i32, i32, i32
  }
}

</mosaic_0001>

<bundles_post_ra>
// kernel: tpu_custom_call.1
= control target key start
LH: loop header
LB: loop body
LE: loop exit
PB: predicated region body
PF: predicated region fallthrough
CT: control target
= control target key end

     0   :  { %vm26_vm0 = vcmask 1043456   ;;  %v323_v3 = vmov 0.0   ;;  %s380_s0 = inlined_call_operand.vmem [shape: f32[2,4,256], index: 0, kind: input, shape index: {}]   ;;  %s381_s1 = inlined_call_operand.vmem [shape: f32[8,4], index: 1, kind: input, shape index: {}]   ;;  %s382_s2 = inlined_call_operand.vmem [shape: f32[8,1], index: 2, kind: input, shape index: {}]   ;;  %s383_s3 = inlined_call_operand.vmem [shape: f32[8,1], index: 3, kind: input, shape index: {}]   ;;  %s384_s4 = inlined_call_operand.hbm [shape: f32[2,8,256], index: 4, kind: output, shape index: {}]  }
   0x1   :  { %v19_v0 = vld [vmem:[%s380_s0] sm:$0xff]  ;;  %v276_v1 = vld [vmem:[%s380_s0 + $0x8] sm:$0xff]  ;;  %95 = vmatprep.mubr.f32.mxu0 %v323_v3  ;;  %178 = vmatprep.mubr.f32.mxu1 %v323_v3 }
   0x2   :  { %v21_v2 = vcombine.high %v19_v0, %v19_v0  ;;  %v109_v4 = vcombine.high %v276_v1, %v276_v1 }
   0x3   :  { %9 = vsyncpa [#allocation3], 0  ;;  %v18_v5 = vld [vmem:[%s381_s1] sm:$0xff]  ;;  %vm22_vm1 = vcmask 31744   ;;  %v324_v26 = vmov 0  }
   0x4   :  { %273 = vmatprep.subr.msk.mxu0 %vm26_vm0, %v21_v2  ;;  %277 = vmatprep.subr.msk.mxu1 %vm26_vm0, %v109_v4  ;;  %v207_v32 = vld [vmem:[%s382_s2] sm:$0xff]  ;;  %s325_s2 = smov [#allocation2]  }
   0x5   :  { %274 = vmatpush1.msk.msra.mxu0 %vm26_vm0, %v19_v0  ;;  %278 = vmatpush1.msk.msra.mxu1 %vm26_vm0, %v276_v1  ;;  %v211_v35 = vld [vmem:[%s383_s3] sm:$0xff]  ;;  %s262_s3 = sshll.u32 %s325_s2, 4  ;;  %s263_s3 = int_to_ptr.vmem [resolvable:$true] %s262_s3 }
   0x6   :  { %275 = vmatmul.mubr.msk.f32.vlgmr.msra.gmra.mrb[0].mxu0 %vm22_vm1, %v18_v5  ;;  %279 = vmatmul.mubr.msk.f32.vlgmr.msra.gmra.mrb[0].mxu1 %vm22_vm1, %v18_v5  ;;  %s299_s23 = scalar_lea.vmem %s263_s3, 512  ;;  %p304_p1 = scmp.lt.s32.totalorder %s263_s3, %s263_s3 }
   0x7   :  { %285 = vset.pattern.permute.xlu0 %v324_v26  ;;  %286 = vset.pattern.permute.xlu1 %v324_v26  ;;  %p300_p0 = scmp.ne.s32.totalorder %s263_s3, %s299_s23  ;;  %p305_p2 = scmp.lt.s32.totalorder %s299_s23, %s299_s23 }
   0x9   :  { %p306_p3 = por %p305_p2, %p304_p1 }
   0xb   :  { %p307_p4 = pnand %p306_p3, %p300_p0 }
  0xd9   :  { %v97_v6 = vpop.f32.mrb[0].mxu0  ;;  %v180_v7 = vpop.f32.mrb[0].mxu1 }
  0xda   :  { %v99_v8 = vpop.f32.mrb[1].mxu0  ;;  %v182_v9 = vpop.f32.mrb[1].mxu1 }
  0xdb   :  { %v102_v10 = vadd.f32 %v99_v8, %v97_v6  ;;  %v185_v11 = vadd.f32 %v182_v9, %v180_v7 }
  0xdd   :  { %103 = vadd.xlane.f32.xlu0 %v102_v10 }
  0xe1   :  { %186 = vadd.xlane.f32.xlu0 %v185_v11 }
 0x16a   :  { %v104_v12 = vpop.xlane.xlu0 %103 }
 0x16e   :  { %v187_v13 = vpop.xlane.xlu0 %186 }
 0x16f   :  { %v188_v14 = vadd.f32 %v187_v13, %v104_v12 }
 0x171   :  { %v189_v15 = vmul.f32 0.001953125, %v188_v14 }
 0x173   :  { %v190_v16 = vsub.f32 %v97_v6, %v189_v15  ;;  %v191_v17 = vsub.f32 %v99_v8, %v189_v15  ;;  %v198_v18 = vsub.f32 %v180_v7, %v189_v15  ;;  %v199_v19 = vsub.f32 %v182_v9, %v189_v15 }
 0x175   :  { %v192_v20 = vmul.f32 %v190_v16, %v190_v16  ;;  %v193_v21 = vmul.f32 %v191_v17, %v191_v17  ;;  %v200_v22 = vmul.f32 %v198_v18, %v198_v18  ;;  %v201_v23 = vmul.f32 %v199_v19, %v199_v19 }
 0x177   :  { %v194_v24 = vadd.f32 %v193_v21, %v192_v20  ;;  %v202_v25 = vadd.f32 %v201_v23, %v200_v22 }
 0x179   :  { %195 = vadd.xlane.f32.xlu1 %v194_v24 }
 0x17d   :  { %203 = vadd.xlane.f32.xlu1 %v202_v25 }
 0x206   :  { %v196_v27 = vpop.xlane.xlu1 %195 }
 0x20a   :  { %v204_v28 = vpop.xlane.xlu1 %203 }
 0x20b   :  { %v205_v29 = vadd.f32 %v204_v28, %v196_v27 }
 0x20d   :  { %v206_v30 = vmul.f32 0.001953125, %v205_v29 }
 0x20f   :  { %v208_v31 = vadd.f32 1e-05, %v206_v30 }
 0x211   :  { %289 = vrsqrt.f32 %v208_v31 }
 0x21b   :  { %v290_v33 = vpop.eup %289 }
 0x21c   :  { %v210_v34 = vmul.f32 %v290_v33, %v207_v32 }
 0x21e   :  { %216 = vperm.xlu0 %285, %v210_v34   ;;  %v212_v36 = vmul.f32 %v210_v34, %v189_v15 }
 0x220   :  { %v213_v37 = vsub.f32 %v211_v35, %v212_v36 }
 0x222   :  { %223 = vperm.xlu1 %286, %v213_v37  }
 0x29d   :  { %v217_v38 = vpop.permute.xlu0 %216 }
 0x29e   :  { %v219_v39 = vmul.f32 %v217_v38, %v97_v6  ;;  %v220_v40 = vmul.f32 %v217_v38, %v99_v8  ;;  %v240_v41 = vmul.f32 %v217_v38, %v180_v7  ;;  %v241_v42 = vmul.f32 %v217_v38, %v182_v9 }
 0x2a1   :  { %v224_v43 = vpop.permute.xlu1 %223 }
 0x2a2   :  { %v226_v44 = vadd.f32 %v224_v43, %v219_v39  ;;  %v227_v45 = vadd.f32 %v224_v43, %v220_v40  ;;  %v242_v46 = vadd.f32 %v240_v41, %v224_v43  ;;  %v243_v47 = vadd.f32 %v241_v42, %v224_v43 }
 0x2a4   :  { %v230_v48 = vmul.f32 0.70710677, %v226_v44  ;;  %v231_v49 = vmul.f32 0.70710677, %v227_v45  ;;  %v246_v50 = vmul.f32 0.70710677, %v242_v46 }
 0x2a5   :  { %v247_v51 = vmul.f32 0.70710677, %v243_v47  ;;  %v228_v54 = vmul.f32 0.5, %v226_v44  ;;  %v229_v57 = vmul.f32 0.5, %v227_v45  ;;  %v244_v61 = vmul.f32 0.5, %v242_v46 }
 0x2a6   :  { %291 = verf.f32 %v230_v48  ;;  %v245_v0 = vmul.f32 0.5, %v243_v47 }
 0x2a7   :  { %293 = verf.f32 %v231_v49 }
 0x2a8   :  { %295 = verf.f32 %v246_v50 }
 0x2a9   :  { %297 = verf.f32 %v247_v51 }
 0x2b0   :  { %v292_v52 = vpop.eup %291 }
 0x2b1   :  { %v294_v53 = vpop.eup %293  ;;  %v234_v55 = vadd.f32 1.0, %v292_v52 }
 0x2b2   :  { %v296_v56 = vpop.eup %295  ;;  %v235_v58 = vadd.f32 1.0, %v294_v53 }
 0x2b3   :  { %v298_v59 = vpop.eup %297  ;;  %v236_v60 = vmul.f32 %v234_v55, %v228_v54  ;;  %v250_v62 = vadd.f32 1.0, %v296_v56 }
 0x2b4   :  { %v237_v63 = vmul.f32 %v235_v58, %v229_v57  ;;  %v251_v1 = vadd.f32 1.0, %v298_v59 }
 0x2b5   :  { %238 = vst [vmem:[#allocation2] sm:$0xff] %v236_v60  ;;  %v252_v2 = vmul.f32 %v250_v62, %v244_v61 }
 0x2b6   :  { %239 = vst [vmem:[#allocation2 + $0x8] sm:$0xff] %v237_v63  ;;  %v253_v3 = vmul.f32 %v251_v1, %v245_v0 }
 0x2b7   :  { %255 = vst [vmem:[#allocation2 + $0x10] sm:$0xff] %v252_v2 }
 0x2b8   :  { %256 = vst [vmem:[#allocation2 + $0x18] sm:$0xff] %v253_v3 }
 0x2b9   :  { %310 = shalt.err (!%p307_p4)
}
 0x2ba   :  { %s311_s26 = scalar_lea.hbm %s384_s4, 512 }
 0x2bb   :  { %p312_p5 = scmp.ne.s32.totalorder %s384_s4, %s311_s26  ;;  %p315_p6 = scmp.lt.u32.totalorder %s311_s26, %s384_s4 }
 0x2bd   :  { %p317_p7 = pnand %p315_p6, %p312_p5 }
 0x2bf   :  { %320 = shalt.err (!%p317_p7)
}
 0x2c0   :  { %s326_s5 = smov 256   ;;  %s327_s6 = smov 16  }
 0x2c1   :  { %268 = dma.vmem_to_hbm [thread:$0]  %s263_s3, 512, %s384_s4, [#allocation3], %s326_s5, %s326_s5, %s327_s6  }
 0x2c2   :  { %321 = dma.done.wait [#allocation3], 512  }
 0x2c3   :  { %322 = vsyncadd [#allocation3], 4294966784 }
 0x2c4   :  { %272 = vsyncpa [#allocation3], 1 }

</bundles_post_ra>
